<compile_context>
chip_gen: v7x
topology: tpu7x:2x2x1
jax: 0.10.0
libtpu: 0.0.40
codegen_flags: <defaults>
</compile_context>

<pallas_src>
import math

import jax
import jax.numpy as jnp
from jax.experimental import pallas as pl
from jax.experimental.pallas import tpu as pltpu


def _round_up(x, m):
    return ((x + m - 1) // m) * m


# ----------------------------------------------------------------------------
# Fused pool + linear kernel.
#   x_ref  : [B, C, thw]  current spatial tile of the input (f32)
#   w_ref  : [C, Np]      fc weight^T / (H*W), lane-padded to Np = 128
#   b_ref  : [1, Np]      fc bias, lane-padded
#   o_ref  : [B, Np]      output (f32)
#   acc_ref: [B, C]       VMEM running spatial sum (persists across grid steps)
# ----------------------------------------------------------------------------
def _ccmb_kernel(x_ref, w_ref, b_ref, o_ref, acc_ref):
    s = pl.program_id(0)

    @pl.when(s == 0)
    def _():
        acc_ref[...] = jnp.zeros_like(acc_ref)

    # Partial spatial sum for this tile (lane reduce on the XLU).
    acc_ref[...] += jnp.sum(x_ref[...], axis=-1)

    @pl.when(s == pl.num_programs(0) - 1)
    def _():
        # 1/(H*W) is folded into w_ref, so this is exactly pooled @ W^T + b.
        o_ref[...] = (
            jnp.dot(acc_ref[...], w_ref[...], preferred_element_type=jnp.float32)
            + b_ref[...]
        )


# ----------------------------------------------------------------------------
# One-time weight preparation (hoisted out of the forward pass).
#   fc_w: [3, C] (torch nn.Linear layout), fc_b: [3]
# Returns:
#   w_packed: [C, Np]  = fc_w.T / (H*W), zero-padded on the lane axis
#   b_pad   : [1, Np]  bias, zero-padded on the lane axis
# ----------------------------------------------------------------------------
def prepare_ccmb_params(fc_w, fc_b, spatial_hw):
    n_out, c_in = fc_w.shape
    np_ = _round_up(max(n_out, 128), 128)          # lane-dense output width

    w_packed = jnp.transpose(fc_w).astype(jnp.float32) / float(spatial_hw)
    w_packed = jnp.pad(w_packed, ((0, 0), (0, np_ - n_out)))        # [C, Np]
    b_pad = jnp.pad(fc_b.astype(jnp.float32), (0, np_ - n_out)).reshape(1, np_)
    return w_packed, b_pad


# ----------------------------------------------------------------------------
# Forward pass: x [B, C, H, W] (NCHW, as in PyTorch) -> [B, 3, 1, 1]
# ----------------------------------------------------------------------------
def ccmb_forward(x_nchw, w_packed, bias_pad, *, n_out=3, max_thw=2048):
    B, C, H, W = x_nchw.shape
    HW = H * W
    Cw, Np = w_packed.shape
    assert Cw == C, (Cw, C)

    x3 = x_nchw.astype(jnp.float32).reshape(B, C, HW)   # free reshape, no copy

    # Spatial tile: a multiple of 128 that divides HW when HW is large and
    # aligned; otherwise take the whole extent as one full-dim block.
    if HW % 128 == 0 and HW > max_thw:
        thw = max_thw
        while HW % thw:
            thw -= 128
    else:
        thw = HW
    nhw = HW // thw

    out = pl.pallas_call(
        _ccmb_kernel,
        out_shape=jax.ShapeDtypeStruct((B, Np), jnp.float32),
        grid_spec=pltpu.PrefetchScalarGridSpec(
            num_scalar_prefetch=0,
            grid=(nhw,),
            in_specs=[
                pl.BlockSpec((B, C, thw), lambda s: (0, 0, s)),
                pl.BlockSpec((C, Np), lambda s: (0, 0)),
                pl.BlockSpec((1, Np), lambda s: (0, 0)),
            ],
            out_specs=pl.BlockSpec((B, Np), lambda s: (0, 0)),
            scratch_shapes=[pltpu.VMEM((B, C), jnp.float32)],
        ),
        compiler_params=pltpu.CompilerParams(
            dimension_semantics=("arbitrary",),   # spatial axis is a reduction
        ),
    )(x3, w_packed, bias_pad)

    return out[:, :n_out].reshape(B, n_out, 1, 1)


# ----------------------------------------------------------------------------
if __name__ == "__main__":
    key = jax.random.PRNGKey(0)
    kx, kw, kb = jax.random.split(key, 3)

    # Small shapes consistent with the module: batch=2, in_channels=4, 16x16.
    B, C, H, W = 2, 4, 16, 16
    x = jax.random.normal(kx, (B, C, H, W), jnp.float32)

    # torch nn.Linear(C, 3) default init: U(-1/sqrt(C), 1/sqrt(C))
    bound = 1.0 / math.sqrt(C)
    fc_w = jax.random.uniform(kw, (3, C), jnp.float32, -bound, bound)
    fc_b = jax.random.uniform(kb, (3,), jnp.float32, -bound, bound)

    w_packed, bias_pad = prepare_ccmb_params(fc_w, fc_b, H * W)

    fwd = jax.jit(ccmb_forward)
    out = fwd(x, w_packed, bias_pad)
    jax.block_until_ready(out)

    # Plain-JAX reference mirroring the torch forward exactly.
    pooled = jnp.mean(x, axis=(2, 3))              # AdaptiveAvgPool2d((1,1)) + flatten
    ref = (pooled @ fc_w.T + fc_b).reshape(B, 3, 1, 1)

    assert out.shape == (B, 3, 1, 1), out.shape
    assert out.dtype == jnp.float32
    assert jnp.allclose(out, ref, atol=1e-2, rtol=1e-2), float(
        jnp.max(jnp.abs(out - ref))
    )
    print("KERNEL_OK")
</pallas_src>

<mosaic_0001>
module attributes {stable_mosaic.version = 11 : i64} {
  func.func @_ccmb_kernel(%arg0: i32, %arg1: memref<2x4x256xf32, #tpu.memory_space<vmem>>, %arg2: memref<4x128xf32, #tpu.memory_space<vmem>>, %arg3: memref<1x128xf32, #tpu.memory_space<vmem>>, %arg4: memref<2x128xf32, #tpu.memory_space<vmem>>, %arg5: memref<2x4xf32, #tpu.memory_space<vmem>>) attributes {dimension_semantics = [#tpu.dimension_semantics<arbitrary>], iteration_bounds = array<i64: 1>, scalar_prefetch = 0 : i64, scratch_operands = 1 : i64, tpu.core_type = #tpu.core_type<tc>, window_params = [{transform_indices = @transform_0, window_bounds = array<i64: 2, 4, 256>}, {pipeline_mode = #tpu.pipeline_mode<synchronous>, transform_indices = @transform_1, window_bounds = array<i64: 4, 128>}, {pipeline_mode = #tpu.pipeline_mode<synchronous>, transform_indices = @transform_2, window_bounds = array<i64: 1, 128>}, {pipeline_mode = #tpu.pipeline_mode<synchronous>, transform_indices = @transform_3, window_bounds = array<i64: 2, 128>}]} {
    %c0_i32 = arith.constant 0 : i32
    %0 = arith.cmpi eq, %arg0, %c0_i32 : i32
    %1 = arith.extui %0 : i1 to i32
    %c0_i32_0 = arith.constant 0 : i32
    %2 = arith.cmpi ne, %1, %c0_i32_0 : i32
    scf.if %2 {
      %cst_9 = arith.constant 0.000000e+00 : f32
      %11 = vector.broadcast %cst_9 : f32 to vector<2x4xf32>
      %c0_10 = arith.constant 0 : index
      %c0_11 = arith.constant 0 : index
      %12 = vector.load %arg5[%c0_10, %c0_11] : memref<2x4xf32, #tpu.memory_space<vmem>>, vector<2x4xf32>
      tpu.vector_store %arg5[%c0_10, %c0_11], %11 {strides = array<i32>} : memref<2x4xf32, #tpu.memory_space<vmem>>, vector<2x4xf32>,
    } else {
    }
    %c0 = arith.constant 0 : index
    %c0_1 = arith.constant 0 : index
    %3 = vector.load %arg5[%c0, %c0_1] : memref<2x4xf32, #tpu.memory_space<vmem>>, vector<2x4xf32>
    %c0_2 = arith.constant 0 : index
    %c0_3 = arith.constant 0 : index
    %c0_4 = arith.constant 0 : index
    %4 = vector.load %arg1[%c0_2, %c0_3, %c0_4] : memref<2x4x256xf32, #tpu.memory_space<vmem>>, vector<2x4x256xf32>
    %cst = arith.constant dense<0.000000e+00> : vector<2x4xf32>
    %5 = vector.multi_reduction <add>, %4, %cst [2] : vector<2x4x256xf32> to vector<2x4xf32>
    %6 = arith.addf %3, %5 : vector<2x4xf32>
    %c0_5 = arith.constant 0 : index
    %c0_6 = arith.constant 0 : index
    %7 = vector.load %arg5[%c0_5, %c0_6] : memref<2x4xf32, #tpu.memory_space<vmem>>, vector<2x4xf32>
    tpu.vector_store %arg5[%c0_5, %c0_6], %6 {strides = array<i32>} : memref<2x4xf32, #tpu.memory_space<vmem>>, vector<2x4xf32>,
    %c0_i32_7 = arith.constant 0 : i32
    %8 = arith.cmpi eq, %arg0, %c0_i32_7 : i32
    %9 = arith.extui %8 : i1 to i32
    %c0_i32_8 = arith.constant 0 : i32
    %10 = arith.cmpi ne, %9, %c0_i32_8 : i32
    scf.if %10 {
      %c0_9 = arith.constant 0 : index
      %c0_10 = arith.constant 0 : index
      %11 = vector.load %arg5[%c0_9, %c0_10] : memref<2x4xf32, #tpu.memory_space<vmem>>, vector<2x4xf32>
      %c0_11 = arith.constant 0 : index
      %c0_12 = arith.constant 0 : index
      %12 = vector.load %arg2[%c0_11, %c0_12] : memref<4x128xf32, #tpu.memory_space<vmem>>, vector<4x128xf32>
      %cst_13 = arith.constant dense<0.000000e+00> : vector<2x128xf32>
      %13 = tpu.matmul %11, %12, %cst_13 {dimension_numbers = #tpu.dot_dimension_numbers<[1], [0], [0], [1], [0, 0, 1, 1], [], []>} : vector<2x4xf32>, vector<4x128xf32>, vector<2x128xf32> -> vector<2x128xf32>
      %c0_14 = arith.constant 0 : index
      %c0_15 = arith.constant 0 : index
      %14 = vector.load %arg3[%c0_14, %c0_15] : memref<1x128xf32, #tpu.memory_space<vmem>>, vector<1x128xf32>
      %15 = vector.broadcast %14 : vector<1x128xf32> to vector<2x128xf32>
      %16 = arith.addf %13, %15 : vector<2x128xf32>
      %c0_16 = arith.constant 0 : index
      %c0_17 = arith.constant 0 : index
      %17 = vector.load %arg4[%c0_16, %c0_17] : memref<2x128xf32, #tpu.memory_space<vmem>>, vector<2x128xf32>
      tpu.vector_store %arg4[%c0_16, %c0_17], %16 {strides = array<i32>} : memref<2x128xf32, #tpu.memory_space<vmem>>, vector<2x128xf32>,
    } else {
    }
    return
  }
  func.func @transform_0(%arg0: i32) -> (i32, i32, i32) {
    %c0_i32 = arith.constant 0 : i32
    %c0_i32_0 = arith.constant 0 : i32
    %c0_i32_1 = arith.constant 0 : i32
    return %c0_i32, %c0_i32_0, %arg0 : i32, i32, i32
  }
  func.func @transform_1(%arg0: i32) -> (i32, i32) {
    %c0_i32 = arith.constant 0 : i32
    %c0_i32_0 = arith.constant 0 : i32
    %c0_i32_1 = arith.constant 0 : i32
    return %c0_i32, %c0_i32_0 : i32, i32
  }
  func.func @transform_2(%arg0: i32) -> (i32, i32) {
    %c0_i32 = arith.constant 0 : i32
    %c0_i32_0 = arith.constant 0 : i32
    %c0_i32_1 = arith.constant 0 : i32
    return %c0_i32, %c0_i32_0 : i32, i32
  }
  func.func @transform_3(%arg0: i32) -> (i32, i32) {
    %c0_i32 = arith.constant 0 : i32
    %c0_i32_0 = arith.constant 0 : i32
    %c0_i32_1 = arith.constant 0 : i32
    return %c0_i32, %c0_i32_0 : i32, i32
  }
}

</mosaic_0001>

<bundles_post_ra>
// kernel: ccmb_forward.1
= control target key start
LH: loop header
LB: loop body
LE: loop exit
PB: predicated region body
PF: predicated region fallthrough
CT: control target
= control target key end

     0   :  { %vm30_vm0 = vcmask 1043456   ;;  %s256_s0 = inlined_call_operand.vmem [shape: f32[2,4,256], index: 0, kind: input, shape index: {}]   ;;  %s257_s1 = inlined_call_operand.vmem [shape: f32[4,128], index: 1, kind: input, shape index: {}]   ;;  %s258_s2 = inlined_call_operand.vmem [shape: f32[1,128], index: 2, kind: input, shape index: {}]   ;;  %s259_s3 = inlined_call_operand.hbm [shape: f32[2,128], index: 3, kind: output, shape index: {}]  }
   0x1   :  { %v22_v0 = vld [vmem:[%s256_s0] sm:$0xff]  ;;  %v23_v1 = vld [vmem:[%s256_s0 + $0x8] sm:$0xff] }
   0x2   :  { %8 = vsyncpa [#allocation4], 0  ;;  %v26_v2 = vcombine.high %v22_v0, %v22_v0  ;;  %v31_v3 = vsel %vm30_vm0, %v22_v0, 0.0  ;;  %v27_v4 = vcombine.high %v23_v1, %v23_v1  ;;  %v36_v6 = vsel %vm30_vm0, %v23_v1, 0.0  ;;  %v63_v11 = vld [vmem:[%s257_s1] sm:$0xf] }
   0x3   :  { %vm19_vm1 = vcmask 25600   ;;  %v202_v10 = vmov 0.0   ;;  %vm203_vm2 = vmmov 0   ;;  %v43_v12 = vlaneseq  ;;  %v163_v24 = vld [vmem:[%s258_s2] ss:$0 sm:$0xff]  ;;  %s204_s18 = smov [#allocation3]  }
   0x4   :  { %v32_v5 = vsel %vm30_vm0, %v26_v2, 0.0  ;;  %v37_v7 = vsel %vm30_vm0, %v27_v4, 0.0  ;;  %20 = vst.msk [vmem:[#allocation2] sm:$0x3] %vm19_vm1, %v202_v10  ;;  %168 = vmatprep.subr.mxu0 %v202_v10  ;;  %170 = vmatprep.mubr.msk.f32.mxu0 %vm203_vm2, %v202_v10  ;;  %vm53_vm3 = vcmask 1041409   ;;  %vm71_vm4 = vcmask 31744  }
   0x5   :  { %v33_v8 = vadd.f32 %v32_v5, %v31_v3  ;;  %v38_v9 = vadd.f32 %v37_v7, %v36_v6  ;;  %169 = vmatpush3.msk.msra.mxu0 %vm30_vm0, %v63_v11  ;;  %v44_v13 = vand.u32 127, %v43_v12  ;;  %v46_v14 = vshrl.u32 %v43_v12, 7  ;;  %s155_s19 = sshll.u32 %s204_s18, 4  ;;  %s156_s19 = int_to_ptr.vmem [resolvable:$true] %s155_s19 }
   0x6   :  { %s178_s20 = scalar_lea.vmem %s156_s19, 32  ;;  %p183_p1 = scmp.lt.s32.totalorder %s156_s19, %s156_s19 }
   0x7   :  { %34 = vadd.xlane.f32.xlu0 %v33_v8  ;;  %v47_v16 = vsub.s32 %v44_v13, %v46_v14  ;;  %p179_p0 = scmp.ne.s32.totalorder %s156_s19, %s178_s20  ;;  %p184_p2 = scmp.lt.s32.totalorder %s178_s20, %s178_s20 }
   0x9   :  { %p185_p3 = por %p184_p2, %p183_p1 }
   0xb   :  { %39 = vadd.xlane.f32.xlu0 %v38_v9  ;;  %v21_v20 = vld [vmem:[#allocation2] sm:$0x3]  ;;  %p186_p4 = pnand %p185_p3, %p179_p0 }
  0x94   :  { %v35_v15 = vpop.xlane.xlu0 %34 }
  0x95   :  { %v48_v18 = vrot.slane %v35_v15, %v47_v16 }
  0x98   :  { %v40_v17 = vpop.xlane.xlu0 %39 }
  0x99   :  { %v52_v19 = vrot.slane %v40_v17, %v47_v16 }
  0x9b   :  { %v54_v21 = vsel %vm53_vm3, %v52_v19, %v48_v18 }
  0x9c   :  { %v56_v22 = vadd.f32 %v54_v21, %v21_v20 }
  0x9e   :  { %58 = vst.msk [vmem:[#allocation2] sm:$0x3] %vm19_vm1, %v56_v22 }
  0xa5   :  { %v62_v23 = vld [vmem:[#allocation2] sm:$0x3] }
  0xa6   :  { %171 = vmatmul.mubr.msk.f32.vlgmr.msra.gmra.mrb[0].mxu0 %vm71_vm4, %v62_v23 }
 0x179   :  { %v144_v25 = vpop.f32.mrb[0].mxu0 }
 0x17a   :  { %v145_v26 = vadd.f32 %v163_v24, %v144_v25  ;;  %v172_v27 = vpop.f32.mrb[1].mxu0 }
 0x17c   :  { %148 = vst [vmem:[#allocation3] sm:$0x3] %v145_v26 }
 0x17d   :  { %189 = shalt.err (!%p186_p4)
}
 0x17e   :  { %s190_s23 = scalar_lea.hbm %s259_s3, 32 }
 0x17f   :  { %p191_p5 = scmp.ne.s32.totalorder %s259_s3, %s190_s23  ;;  %p194_p6 = scmp.lt.u32.totalorder %s190_s23, %s259_s3 }
 0x181   :  { %p196_p7 = pnand %p194_p6, %p191_p5 }
 0x183   :  { %199 = shalt.err (!%p196_p7)
}
 0x184   :  { %158 = dma.vmem_to_hbm [thread:$0]  %s156_s19, 32, %s259_s3, [#allocation4]  }
 0x185   :  { %200 = dma.done.wait [#allocation4], 32  }
 0x186   :  { %201 = vsyncadd [#allocation4], 4294967264 }
 0x187   :  { %162 = vsyncpa [#allocation4], 1 }

</bundles_post_ra>
